<compile_context>
chip_gen: v7x
topology: tpu7x:2x2x1
jax: 0.10.0
libtpu: 0.0.40
codegen_flags: <defaults>
</compile_context>

<pallas_src>
import functools

import jax
import jax.numpy as jnp
from jax.experimental import pallas as pl
from jax.experimental.pallas import tpu as pltpu


_VMEM_LIMIT_BYTES = 32 * 1024 * 1024  # safe on v5e/v6e/v7x; >> what we request.


def _sublane_quantum(dtype) -> int:
    """Sublane tiling quantum for a dtype (8 for f32, 16 for bf16, 32 for i8)."""
    return max(8, 32 // jnp.dtype(dtype).itemsize)


def _pick_tile(total: int, quantum: int, cap: int) -> int:
    """Largest multiple of `quantum` dividing `total` that is <= cap, else `total`.

    The full-dim fallback keeps the (8,128)/full-dim BlockSpec rule satisfied for
    awkward sizes.
    # TODO(synk): add a masked remainder path instead of the full-dim fallback
    # for very large dims with no quantum-multiple divisor.
    """
    start = (min(cap, total) // quantum) * quantum
    for size in range(start, 0, -quantum):
        if total % size == 0:
            return size
    return total


def _stats_kernel(x1_ref, x2_ref, msum_ref, acc_ref, *, inv_hw, lane_chunks):
    # x1_ref / x2_ref: (row_tile, hw_tile)   spatial tile of input1 / input2
    # msum_ref:        (row_tile, 1)         output: mean(input1)+mean(input2)
    # acc_ref:         (row_tile, 128|1)     VMEM running per-row sum
    t = pl.program_id(1)

    @pl.when(t == 0)
    def _init():
        acc_ref[...] = jnp.zeros_like(acc_ref)

    # Single pass: sum(input1) + sum(input2) accumulated together.
    tile = x1_ref[...].astype(jnp.float32) + x2_ref[...].astype(jnp.float32)
    if lane_chunks > 0:
        # Fold hw_tile lanes down to 128 with pure VPU adds over static,
        # vreg-aligned slices; the lone XLU cross-lane reduce is in finalize.
        partial = tile[:, 0:128]
        for i in range(1, lane_chunks):
            partial = partial + tile[:, i * 128:(i + 1) * 128]
        acc_ref[...] += partial
    else:
        # hw_tile is not a multiple of 128 (tiny/awkward H*W): reduce per step.
        acc_ref[...] += jnp.sum(tile, axis=1, keepdims=True)

    @pl.when(t == pl.num_programs(1) - 1)
    def _finalize():
        if lane_chunks > 0:
            row_sum = jnp.sum(acc_ref[...], axis=1, keepdims=True)
        else:
            row_sum = acc_ref[...]
        msum_ref[...] = row_sum * inv_hw


def _apply_kernel(scale_ref, diff_ref, o_ref):
    # scale_ref: (row_tile, 1);  diff_ref / o_ref: (row_tile, hw_tile)
    o_ref[...] = (diff_ref[...].astype(jnp.float32)
                  * scale_ref[...]).astype(o_ref.dtype)


def simple_temporal_attention(input1, input2, input12_diff, conv_w, conv_b, gamma,
                              *, row_tile_cap=256, stats_hw_cap=1024,
                              apply_hw_cap=2048, donate_diff=False):
    """input*: (N,C,H,W); conv_w: (C,C,1,1); conv_b: (C,); gamma: scalar."""
    N, C, H, W = input1.shape
    HW, NC = H * W, N * C

    # Lane-dense 2-D views (contiguous trailing-dim merges -> no data movement).
    x1 = input1.reshape(NC, HW)
    x2 = input2.reshape(NC, HW)
    diff = input12_diff.reshape(NC, HW)

    row_q = _sublane_quantum(input1.dtype)
    row_tile = _pick_tile(NC, row_q, row_tile_cap)
    stats_hw = _pick_tile(HW, 128, stats_hw_cap)   # modest -> >=multiple grid
    apply_hw = _pick_tile(HW, 128, apply_hw_cap)   # steps for DMA overlap

    stats_chunks = stats_hw // 128 if stats_hw % 128 == 0 else 0
    acc_lanes = 128 if stats_chunks > 0 else 1

    # --- Kernel 1: per-(n,c) mean1+mean2 (reduction over H*W) ----------------
    msum_col = pl.pallas_call(
        functools.partial(_stats_kernel, inv_hw=1.0 / float(HW),
                          lane_chunks=stats_chunks),
        out_shape=jax.ShapeDtypeStruct((NC, 1), jnp.float32),
        grid_spec=pltpu.PrefetchScalarGridSpec(
            num_scalar_prefetch=0,
            grid=(NC // row_tile, HW // stats_hw),
            in_specs=[
                pl.BlockSpec((row_tile, stats_hw), lambda r, t: (r, t)),
                pl.BlockSpec((row_tile, stats_hw), lambda r, t: (r, t)),
            ],
            out_specs=pl.BlockSpec((row_tile, 1), lambda r, t: (r, 0)),
            scratch_shapes=[pltpu.VMEM((row_tile, acc_lanes), jnp.float32)],
        ),
        compiler_params=pltpu.CompilerParams(
            dimension_semantics=("parallel", "arbitrary"),
            vmem_limit_bytes=_VMEM_LIMIT_BYTES),
    )(x1, x2)

    # --- 1x1 conv + sigmoid + gamma blend on the tiny (N, C) means -----------
    # Plain JAX (a few KB; XLA fuses it).  Avoids the O((N*C)^2) block-diagonal
    # weight that previously had to live in VMEM as a single block.
    w2 = conv_w.reshape(C, C).astype(jnp.float32)                  # (Cout, Cin)
    bias = conv_b.astype(jnp.float32).reshape(1, C)
    logits = msum_col.reshape(N, C) @ w2.T + bias                  # (N, C)
    gamma_f = jnp.asarray(gamma, jnp.float32).reshape(())
    scale_col = (1.0 + gamma_f * jax.nn.sigmoid(logits)
                 ).astype(jnp.float32).reshape(NC, 1)

    # --- Kernel 2: out = diff * scale  (pure elementwise, fully parallel) ----
    out2d = pl.pallas_call(
        _apply_kernel,
        out_shape=jax.ShapeDtypeStruct((NC, HW), input12_diff.dtype),
        grid_spec=pltpu.PrefetchScalarGridSpec(
            num_scalar_prefetch=0,
            grid=(NC // row_tile, HW // apply_hw),
            in_specs=[
                pl.BlockSpec((row_tile, 1), lambda r, t: (r, 0)),
                pl.BlockSpec((row_tile, apply_hw), lambda r, t: (r, t)),
            ],
            out_specs=pl.BlockSpec((row_tile, apply_hw), lambda r, t: (r, t)),
        ),
        compiler_params=pltpu.CompilerParams(
            dimension_semantics=("parallel", "parallel"),
            vmem_limit_bytes=_VMEM_LIMIT_BYTES),
        input_output_aliases=({1: 0} if donate_diff else {}),
    )(scale_col, diff)

    return out2d.reshape(N, C, H, W)


if __name__ == "__main__":
    key = jax.random.PRNGKey(0)
    k1, k2, k3, kw, kb = jax.random.split(key, 5)

    N, C, H, W = 2, 4, 16, 16

    input1 = jax.random.normal(k1, (N, C, H, W), jnp.float32)
    input2 = jax.random.normal(k2, (N, C, H, W), jnp.float32)
    input12_diff = jax.random.normal(k3, (N, C, H, W), jnp.float32)

    # Conv2d(C, C, kernel_size=1) parameters (PyTorch default init ranges).
    bound = 1.0 / (C ** 0.5)
    conv_w = jax.random.uniform(kw, (C, C, 1, 1), jnp.float32, -bound, bound)
    conv_b = jax.random.uniform(kb, (C,), jnp.float32, -bound, bound)
    # nn.Parameter(torch.zeros(1)) would make the attention branch a no-op;
    # use a deterministic nonzero gamma so the full path is exercised.
    gamma = jnp.float32(0.5)

    attn = jax.jit(simple_temporal_attention)
    out = jax.block_until_ready(attn(input1, input2, input12_diff,
                                     conv_w, conv_b, gamma))

    # Pure-JAX reference (mirrors the PyTorch forward exactly).
    mean1 = jnp.mean(input1, axis=(2, 3), keepdims=True)
    mean2 = jnp.mean(input2, axis=(2, 3), keepdims=True)
    logits = jnp.einsum("oc,nchw->nohw", conv_w.reshape(C, C), mean1 + mean2) \
        + conv_b.reshape(1, C, 1, 1)
    ref = gamma * jax.nn.sigmoid(logits) * input12_diff + input12_diff

    assert out.shape == (N, C, H, W), out.shape
    assert jnp.allclose(out, ref, rtol=1e-5, atol=1e-5), \
        float(jnp.max(jnp.abs(out - ref)))
    print("KERNEL_OK")
</pallas_src>

<mosaic_0001>
module attributes {stable_mosaic.version = 11 : i64} {
  func.func @_stats_kernel(%arg0: i32, %arg1: i32, %arg2: memref<8x256xf32, #tpu.memory_space<vmem>>, %arg3: memref<8x256xf32, #tpu.memory_space<vmem>>, %arg4: memref<8x1xf32, #tpu.memory_space<vmem>>, %arg5: memref<8x128xf32, #tpu.memory_space<vmem>>) attributes {dimension_semantics = [#tpu.dimension_semantics<parallel>, #tpu.dimension_semantics<arbitrary>], iteration_bounds = array<i64: 1, 1>, scalar_prefetch = 0 : i64, scratch_operands = 1 : i64, tpu.core_type = #tpu.core_type<tc>, window_params = [{transform_indices = @transform_0, window_bounds = array<i64: 8, 256>}, {transform_indices = @transform_1, window_bounds = array<i64: 8, 256>}, {transform_indices = @transform_2, window_bounds = array<i64: 8, 1>}]} {
    %c0_i32 = arith.constant 0 : i32
    %0 = arith.cmpi eq, %arg1, %c0_i32 : i32
    %1 = arith.extui %0 : i1 to i32
    %c0_i32_0 = arith.constant 0 : i32
    %2 = arith.cmpi ne, %1, %c0_i32_0 : i32
    scf.if %2 {
      %cst = arith.constant 0.000000e+00 : f32
      %15 = vector.broadcast %cst : f32 to vector<8x128xf32>
      %c0_10 = arith.constant 0 : index
      %c0_11 = arith.constant 0 : index
      %16 = vector.load %arg5[%c0_10, %c0_11] : memref<8x128xf32, #tpu.memory_space<vmem>>, vector<8x128xf32>
      tpu.vector_store %arg5[%c0_10, %c0_11], %15 {strides = array<i32>} : memref<8x128xf32, #tpu.memory_space<vmem>>, vector<8x128xf32>,
    } else {
    }
    %c0 = arith.constant 0 : index
    %c0_1 = arith.constant 0 : index
    %3 = vector.load %arg2[%c0, %c0_1] : memref<8x256xf32, #tpu.memory_space<vmem>>, vector<8x256xf32>
    %c0_2 = arith.constant 0 : index
    %c0_3 = arith.constant 0 : index
    %4 = vector.load %arg3[%c0_2, %c0_3] : memref<8x256xf32, #tpu.memory_space<vmem>>, vector<8x256xf32>
    %5 = arith.addf %3, %4 : vector<8x256xf32>
    %6 = vector.extract_strided_slice %5 {offsets = [0, 0], sizes = [8, 128], strides = [1, 1]} : vector<8x256xf32> to vector<8x128xf32>
    %7 = vector.extract_strided_slice %5 {offsets = [0, 128], sizes = [8, 128], strides = [1, 1]} : vector<8x256xf32> to vector<8x128xf32>
    %8 = arith.addf %6, %7 : vector<8x128xf32>
    %c0_4 = arith.constant 0 : index
    %c0_5 = arith.constant 0 : index
    %9 = vector.load %arg5[%c0_4, %c0_5] : memref<8x128xf32, #tpu.memory_space<vmem>>, vector<8x128xf32>
    %10 = arith.addf %9, %8 : vector<8x128xf32>
    %c0_6 = arith.constant 0 : index
    %c0_7 = arith.constant 0 : index
    %11 = vector.load %arg5[%c0_6, %c0_7] : memref<8x128xf32, #tpu.memory_space<vmem>>, vector<8x128xf32>
    tpu.vector_store %arg5[%c0_6, %c0_7], %10 {strides = array<i32>} : memref<8x128xf32, #tpu.memory_space<vmem>>, vector<8x128xf32>,
    %c0_i32_8 = arith.constant 0 : i32
    %12 = arith.cmpi eq, %arg1, %c0_i32_8 : i32
    %13 = arith.extui %12 : i1 to i32
    %c0_i32_9 = arith.constant 0 : i32
    %14 = arith.cmpi ne, %13, %c0_i32_9 : i32
    scf.if %14 {
      %c0_10 = arith.constant 0 : index
      %c0_11 = arith.constant 0 : index
      %15 = vector.load %arg5[%c0_10, %c0_11] : memref<8x128xf32, #tpu.memory_space<vmem>>, vector<8x128xf32>
      %cst = arith.constant dense<0.000000e+00> : vector<8xf32>
      %16 = vector.multi_reduction <add>, %15, %cst [1] : vector<8x128xf32> to vector<8xf32>
      %17 = vector.shape_cast %16 : vector<8xf32> to vector<8x1xf32>
      %cst_12 = arith.constant 3.906250e-03 : f32
      %18 = vector.broadcast %cst_12 : f32 to vector<8x1xf32>
      %19 = arith.mulf %17, %18 : vector<8x1xf32>
      %c0_13 = arith.constant 0 : index
      %c0_14 = arith.constant 0 : index
      %20 = vector.load %arg4[%c0_13, %c0_14] : memref<8x1xf32, #tpu.memory_space<vmem>>, vector<8x1xf32>
      tpu.vector_store %arg4[%c0_13, %c0_14], %19 {strides = array<i32>} : memref<8x1xf32, #tpu.memory_space<vmem>>, vector<8x1xf32>,
    } else {
    }
    return
  }
  func.func @transform_0(%arg0: i32, %arg1: i32) -> (i32, i32) {
    %c0_i32 = arith.constant 0 : i32
    return %arg0, %arg1 : i32, i32
  }
  func.func @transform_1(%arg0: i32, %arg1: i32) -> (i32, i32) {
    %c0_i32 = arith.constant 0 : i32
    return %arg0, %arg1 : i32, i32
  }
  func.func @transform_2(%arg0: i32, %arg1: i32) -> (i32, i32) {
    %c0_i32 = arith.constant 0 : i32
    %c0_i32_0 = arith.constant 0 : i32
    return %arg0, %c0_i32 : i32, i32
  }
}

module attributes {stable_mosaic.version = 11 : i64} {
  func.func @_apply_kernel(%arg0: i32, %arg1: i32, %arg2: memref<8x1xf32, #tpu.memory_space<vmem>>, %arg3: memref<8x256xf32, #tpu.memory_space<vmem>>, %arg4: memref<8x256xf32, #tpu.memory_space<vmem>>) attributes {dimension_semantics = [#tpu.dimension_semantics<parallel>, #tpu.dimension_semantics<parallel>], iteration_bounds = array<i64: 1, 1>, scalar_prefetch = 0 : i64, scratch_operands = 0 : i64, tpu.core_type = #tpu.core_type<tc>, window_params = [{transform_indices = @transform_0, window_bounds = array<i64: 8, 1>}, {transform_indices = @transform_1, window_bounds = array<i64: 8, 256>}, {transform_indices = @transform_2, window_bounds = array<i64: 8, 256>}]} {
    %c0 = arith.constant 0 : index
    %c0_0 = arith.constant 0 : index
    %0 = vector.load %arg3[%c0, %c0_0] : memref<8x256xf32, #tpu.memory_space<vmem>>, vector<8x256xf32>
    %c0_1 = arith.constant 0 : index
    %c0_2 = arith.constant 0 : index
    %1 = vector.load %arg2[%c0_1, %c0_2] : memref<8x1xf32, #tpu.memory_space<vmem>>, vector<8x1xf32>
    %2 = vector.broadcast %1 : vector<8x1xf32> to vector<8x256xf32>
    %3 = arith.mulf %0, %2 : vector<8x256xf32>
    %c0_3 = arith.constant 0 : index
    %c0_4 = arith.constant 0 : index
    %4 = vector.load %arg4[%c0_3, %c0_4] : memref<8x256xf32, #tpu.memory_space<vmem>>, vector<8x256xf32>
    tpu.vector_store %arg4[%c0_3, %c0_4], %3 {strides = array<i32>} : memref<8x256xf32, #tpu.memory_space<vmem>>, vector<8x256xf32>,
    return
  }
  func.func @transform_0(%arg0: i32, %arg1: i32) -> (i32, i32) {
    %c0_i32 = arith.constant 0 : i32
    %c0_i32_0 = arith.constant 0 : i32
    return %arg0, %c0_i32 : i32, i32
  }
  func.func @transform_1(%arg0: i32, %arg1: i32) -> (i32, i32) {
    %c0_i32 = arith.constant 0 : i32
    return %arg0, %arg1 : i32, i32
  }
  func.func @transform_2(%arg0: i32, %arg1: i32) -> (i32, i32) {
    %c0_i32 = arith.constant 0 : i32
    return %arg0, %arg1 : i32, i32
  }
}

</mosaic_0001>

<bundles_post_ra>
// kernel: simple_temporal_attention.2
= control target key start
LH: loop header
LB: loop body
LE: loop exit
PB: predicated region body
PF: predicated region fallthrough
CT: control target
= control target key end

     0   :  { %vm33_vm0 = vcmask 7168   ;;  %s69_s0 = inlined_call_operand.vmem [shape: f32[8,256], index: 0, kind: input, shape index: {}]   ;;  %s70_s1 = inlined_call_operand.vmem [shape: f32[8,256], index: 1, kind: input, shape index: {}]   ;;  %s71_s2 = inlined_call_operand.vmem [shape: f32[8,1], index: 2, kind: output, shape index: {}]  }
   0x1   :  { %v16_v0 = vld [vmem:[%s69_s0] sm:$0xff]  ;;  %v17_v1 = vld [vmem:[%s69_s0 + $0x8] sm:$0xff] }
   0x2   :  { %v18_v2 = vld [vmem:[%s70_s1] sm:$0xff]  ;;  %v19_v3 = vld [vmem:[%s70_s1 + $0x8] sm:$0xff] }
   0x3   :  { %v20_v4 = vadd.f32 %v18_v2, %v16_v0  ;;  %v21_v5 = vadd.f32 %v19_v3, %v17_v1 }
   0x5   :  { %v22_v6 = vadd.f32 %v21_v5, %v20_v4 }
   0x7   :  { %30 = vadd.xlane.f32.xlu0 %v22_v6 }
  0x94   :  { %v31_v7 = vpop.xlane.xlu0 %30 }
  0x95   :  { %v32_v8 = vmul.f32 0.00390625, %v31_v7 }
  0x97   :  { %34 = vst.msk [vmem:[%s71_s2] sm:$0xff] %vm33_vm0, %v32_v8 }

// kernel: simple_temporal_attention.3
= control target key start
LH: loop header
LB: loop body
LE: loop exit
PB: predicated region body
PF: predicated region fallthrough
CT: control target
= control target key end

     0   :  { %v29_v0 = vmov 0   ;;  %s60_s0 = inlined_call_operand.vmem [shape: f32[8,1], index: 0, kind: input, shape index: {}]   ;;  %s61_s1 = inlined_call_operand.vmem [shape: f32[8,256], index: 1, kind: input, shape index: {}]   ;;  %s62_s2 = inlined_call_operand.vmem [shape: f32[8,256], index: 2, kind: output, shape index: {}]  }
   0x1   :  { %28 = vset.pattern.permute.xlu0 %v29_v0  ;;  %v13_v1 = vld [vmem:[%s60_s0] sm:$0xff]  ;;  %v12_v3 = vld [vmem:[%s61_s1 + $0x8] sm:$0xff] }
   0x2   :  { %16 = vperm.xlu0 %28, %v13_v1   ;;  %v11_v2 = vld [vmem:[%s61_s1] sm:$0xff] }
  0x81   :  { %v17_v4 = vpop.permute.xlu0 %16 }
  0x82   :  { %v19_v5 = vmul.f32 %v17_v4, %v11_v2  ;;  %v20_v6 = vmul.f32 %v17_v4, %v12_v3 }
  0x84   :  { %21 = vst [vmem:[%s62_s2] sm:$0xff] %v19_v5  ;;  %22 = vst [vmem:[%s62_s2 + $0x8] sm:$0xff] %v20_v6 }

</bundles_post_ra>
